<compile_context>
chip_gen: v7x
topology: tpu7x:2x2x1
jax: 0.10.0
libtpu: 0.0.40
codegen_flags: <defaults>
</compile_context>

<pallas_src>
import functools

import jax
import jax.numpy as jnp
from jax.experimental import pallas as pl
from jax.experimental.pallas import tpu as pltpu


def _round_up(x: int, m: int) -> int:
    return (x + m - 1) // m * m


def _cdiv(a: int, b: int) -> int:
    return (a + b - 1) // b


def bigraph_contrast_kernel(a_ref, xw_ref, b_ref, alpha_ref, o_ref, *, deg_col):
    # a_ref:     (TM, TK)    int8 adjacency tile (0/1 incl. self-loops)
    # xw_ref:    (TK, Hpad)  bf16 tile of [X @ W | ones | zero-pad]
    # b_ref:     (1, Hpad)   fp32 bias (zero-padded)
    # alpha_ref: (1,) SMEM   PReLU slope
    # o_ref:     (TM, Hpad)  fp32 output block; resident across the K axis, so
    #                        it doubles as the accumulator.
    k = pl.program_id(1)

    @pl.when(k == 0)
    def _init():
        o_ref[...] = jnp.zeros_like(o_ref)

    # int8 0/1 tile dequantized to bf16 (exact) on the VPU, MXU matmul with
    # fp32 accumulation straight into the resident output block.
    a_tile = a_ref[...].astype(jnp.bfloat16)
    o_ref[...] += jnp.dot(a_tile, xw_ref[...], preferred_element_type=jnp.float32)

    @pl.when(k == pl.num_programs(1) - 1)
    def _finalize():
        acc = o_ref[...]
        # Degree rode along in column `deg_col` (ones column of XW).
        deg = jnp.maximum(acc[:, deg_col:deg_col + 1], 1.0)   # guard padded rows
        h = acc * pl.reciprocal(deg, approx=True) + b_ref[...]
        alpha = alpha_ref[0]
        o_ref[...] = jnp.where(h > 0.0, h, alpha * h)


@functools.partial(jax.jit, static_argnames=("tm", "tk"))
def bigraph_contrast_layer(a_dst, x, w, b, alpha, *, tm=1024, tk=2048):
    """Returns h[pos_nodes]: (N_dst, hidden_dim) fp32."""
    n_dst, n_total = a_dst.shape
    in_dim, hidden_dim = w.shape
    assert x.shape == (n_total, in_dim)

    # --- reassociate: small (N, hidden) matmul done once by XLA in fp32 ---
    xw = jnp.dot(x, w, preferred_element_type=jnp.float32)             # (N, H)
    xw_aug = jnp.concatenate(
        [xw, jnp.ones((n_total, 1), jnp.float32)], axis=1)             # (N, H+1)

    h_aug = hidden_dim + 1
    h_pad = _round_up(h_aug, 128)          # lane-dense accumulator / output width
    deg_col = hidden_dim                   # lane carrying the degree

    # --- tile sizes: tm multiple of 32 (int8 packing), tk multiple of 128 ---
    m_align, k_align = 32, 128
    m_round = _round_up(n_dst, m_align)
    k_round = _round_up(n_total, k_align)
    tm = _round_up(min(tm, m_round), m_align)
    tk = _round_up(min(tk, k_round), k_align)
    # Prefer >= 2 row-blocks so the "parallel" M axis can be split across both
    # v7x TensorCores (megacore); harmless elsewhere.
    if m_round > m_align and tm >= m_round:
        tm = _round_up(_cdiv(m_round, 2), m_align)
    m_pad = _round_up(n_dst, tm)
    k_pad = _round_up(n_total, tk)

    # --- single fused cast+pad pass per operand (no zeros + scatter copy) ---
    a_i8 = jnp.pad(a_dst.astype(jnp.int8),
                   ((0, m_pad - n_dst), (0, k_pad - n_total)))          # (Mp, Kp)
    xw_bf = jnp.pad(xw_aug.astype(jnp.bfloat16),
                    ((0, k_pad - n_total), (0, h_pad - h_aug)))         # (Kp, Hp)
    b_p = jnp.pad(b.reshape(1, hidden_dim).astype(jnp.float32),
                  ((0, 0), (0, h_pad - hidden_dim)))                    # (1, Hp)
    alpha = alpha.reshape((1,)).astype(jnp.float32)

    grid = (m_pad // tm, k_pad // tk)

    cost = pl.CostEstimate(
        flops=2 * m_pad * k_pad * h_pad,
        transcendentals=0,
        bytes_accessed=(m_pad * k_pad * 1)                      # A, int8, read once
                       + (m_pad // tm) * (k_pad * h_pad * 2)    # XW restreamed / M-block
                       + (m_pad * h_pad * 4),                   # output
    )

    # VMEM footprint: double-buffered A / XW / out tiles + bf16 dequant temp.
    footprint = (2 * tm * tk * 1          # A tiles (int8)
                 + tm * tk * 2            # in-kernel bf16 dequant of the A tile
                 + 2 * tk * h_pad * 2     # XW tiles (bf16)
                 + 2 * tm * h_pad * 4     # output tiles (fp32)
                 + 2 * h_pad * 4)         # bias
    vmem_limit = max(16 << 20, min(2 * footprint + (4 << 20), 64 << 20))

    out_padded = pl.pallas_call(
        functools.partial(bigraph_contrast_kernel, deg_col=deg_col),
        out_shape=jax.ShapeDtypeStruct((m_pad, h_pad), jnp.float32),
        grid_spec=pltpu.PrefetchScalarGridSpec(
            num_scalar_prefetch=0,
            grid=grid,
            in_specs=[
                pl.BlockSpec((tm, tk), lambda i, k: (i, k)),        # A tile (int8)
                pl.BlockSpec((tk, h_pad), lambda i, k: (k, 0)),     # [XW | 1] tile
                pl.BlockSpec((1, h_pad), lambda i, k: (0, 0)),      # bias
                pl.BlockSpec(memory_space=pltpu.MemorySpace.SMEM),  # PReLU alpha
            ],
            out_specs=pl.BlockSpec((tm, h_pad), lambda i, k: (i, 0)),
        ),
        compiler_params=pltpu.CompilerParams(
            dimension_semantics=("parallel", "arbitrary"),
            vmem_limit_bytes=int(vmem_limit),
        ),
        cost_estimate=cost,
    )(a_i8, xw_bf, b_p, alpha)

    # strip lane / row padding (and the degree column)
    return out_padded[:n_dst, :hidden_dim]


def reference(a_dst, x, w, b, alpha):
    agg = a_dst @ x
    deg = jnp.sum(a_dst, axis=-1, keepdims=True)
    h = (agg / deg) @ w + b
    return jnp.where(h > 0, h, alpha[0] * h)


if __name__ == "__main__":
    key = jax.random.PRNGKey(0)
    k_edges, k_xsrc, k_xdst, k_w = jax.random.split(key, 4)

    # Bipartite graph: N_src source nodes, N_dst destination (predict_type) nodes.
    N_src, N_dst = 300, 40
    in_dim, hidden_dim = 32, 16
    N = N_src + N_dst

    # Random bipartite edges src -> dst (dense 0/1 adjacency), plus the
    # self-loop identity block added by dgl.add_self_loop for the dst nodes.
    a_bip = (jax.random.uniform(k_edges, (N_dst, N_src)) < 0.3).astype(jnp.float32)
    a_dst = jnp.concatenate([a_bip, jnp.eye(N_dst, dtype=jnp.float32)], axis=1)  # (N_dst, N)

    # Homogeneous node features: [src features ; dst features]
    x_src = jax.random.normal(k_xsrc, (N_src, in_dim), dtype=jnp.float32)
    x_dst = jax.random.normal(k_xdst, (N_dst, in_dim), dtype=jnp.float32)
    x = jnp.concatenate([x_src, x_dst], axis=0)  # (N, in_dim)

    # GraphConv parameters: Xavier-normal weight, zero bias; PReLU slope = 0.25.
    xavier_std = (2.0 / (in_dim + hidden_dim)) ** 0.5
    w = xavier_std * jax.random.normal(k_w, (in_dim, hidden_dim), dtype=jnp.float32)
    b = jnp.zeros((1, hidden_dim), dtype=jnp.float32)
    alpha = jnp.array([0.25], dtype=jnp.float32)

    # Small tiles so the tiny demo still exercises a multi-tile grid
    # (M axis: 40 -> 2 blocks of 32; K axis: 340 -> 3 blocks of 128).
    out = bigraph_contrast_layer(a_dst, x, w, b, alpha, tm=32, tk=128)
    out = jax.block_until_ready(out)

    ref = reference(a_dst, x, w, b, alpha)
    assert out.shape == (N_dst, hidden_dim)
    # Tolerance loosened for bf16 XW + approx reciprocal (fp32 accumulation).
    assert jnp.allclose(out, ref, atol=1e-2, rtol=5e-2), (
        f"mismatch vs reference, max abs err = {jnp.max(jnp.abs(out - ref))}")

    print("KERNEL_OK")
</pallas_src>

<mosaic_0001>
module attributes {stable_mosaic.version = 11 : i64} {
  func.func @bigraph_contrast_kernel(%arg0: i32, %arg1: i32, %arg2: memref<32x128xi8, #tpu.memory_space<vmem>>, %arg3: memref<128x128xbf16, #tpu.memory_space<vmem>>, %arg4: memref<1x128xf32, #tpu.memory_space<vmem>>, %arg5: memref<1xf32, #tpu.memory_space<smem>>, %arg6: memref<32x128xf32, #tpu.memory_space<vmem>>) attributes {dimension_semantics = [#tpu.dimension_semantics<parallel>, #tpu.dimension_semantics<arbitrary>], iteration_bounds = array<i64: 2, 3>, scalar_prefetch = 0 : i64, scratch_operands = 0 : i64, tpu.core_type = #tpu.core_type<tc>, window_params = [{transform_indices = @transform_0, window_bounds = array<i64: 32, 128>}, {transform_indices = @transform_1, window_bounds = array<i64: 128, 128>}, {pipeline_mode = #tpu.pipeline_mode<synchronous>, transform_indices = @transform_2, window_bounds = array<i64: 1, 128>}, {transform_indices = @transform_3, window_bounds = array<i64: 1>}, {transform_indices = @transform_4, window_bounds = array<i64: 32, 128>}]} {
    %c0_i32 = arith.constant 0 : i32
    %0 = arith.cmpi eq, %arg1, %c0_i32 : i32
    %1 = arith.extui %0 : i1 to i32
    %c0_i32_0 = arith.constant 0 : i32
    %2 = arith.cmpi ne, %1, %c0_i32_0 : i32
    scf.if %2 {
      %cst_9 = arith.constant 0.000000e+00 : f32
      %13 = vector.broadcast %cst_9 : f32 to vector<32x128xf32>
      %c0_10 = arith.constant 0 : index
      %c0_11 = arith.constant 0 : index
      %14 = vector.load %arg6[%c0_10, %c0_11] : memref<32x128xf32, #tpu.memory_space<vmem>>, vector<32x128xf32>
      tpu.vector_store %arg6[%c0_10, %c0_11], %13 {strides = array<i32>} : memref<32x128xf32, #tpu.memory_space<vmem>>, vector<32x128xf32>,
    } else {
    }
    %c0 = arith.constant 0 : index
    %c0_1 = arith.constant 0 : index
    %3 = vector.load %arg2[%c0, %c0_1] : memref<32x128xi8, #tpu.memory_space<vmem>>, vector<32x128xi8>
    %4 = arith.sitofp %3 : vector<32x128xi8> to vector<32x128xbf16>
    %c0_2 = arith.constant 0 : index
    %c0_3 = arith.constant 0 : index
    %5 = vector.load %arg6[%c0_2, %c0_3] : memref<32x128xf32, #tpu.memory_space<vmem>>, vector<32x128xf32>
    %c0_4 = arith.constant 0 : index
    %c0_5 = arith.constant 0 : index
    %6 = vector.load %arg3[%c0_4, %c0_5] : memref<128x128xbf16, #tpu.memory_space<vmem>>, vector<128x128xbf16>
    %cst = arith.constant dense<0.000000e+00> : vector<32x128xf32>
    %7 = tpu.matmul %4, %6, %cst {dimension_numbers = #tpu.dot_dimension_numbers<[1], [0], [0], [1], [0, 0, 1, 1], [], []>} : vector<32x128xbf16>, vector<128x128xbf16>, vector<32x128xf32> -> vector<32x128xf32>
    %8 = arith.addf %5, %7 : vector<32x128xf32>
    %c0_6 = arith.constant 0 : index
    %c0_7 = arith.constant 0 : index
    %9 = vector.load %arg6[%c0_6, %c0_7] : memref<32x128xf32, #tpu.memory_space<vmem>>, vector<32x128xf32>
    tpu.vector_store %arg6[%c0_6, %c0_7], %8 {strides = array<i32>} : memref<32x128xf32, #tpu.memory_space<vmem>>, vector<32x128xf32>,
    %c2_i32 = arith.constant 2 : i32
    %10 = arith.cmpi eq, %arg1, %c2_i32 : i32
    %11 = arith.extui %10 : i1 to i32
    %c0_i32_8 = arith.constant 0 : i32
    %12 = arith.cmpi ne, %11, %c0_i32_8 : i32
    scf.if %12 {
      %c0_9 = arith.constant 0 : index
      %c0_10 = arith.constant 0 : index
      %13 = vector.load %arg6[%c0_9, %c0_10] : memref<32x128xf32, #tpu.memory_space<vmem>>, vector<32x128xf32>
      %14 = vector.extract_strided_slice %13 {offsets = [0, 16], sizes = [32, 1], strides = [1, 1]} : vector<32x128xf32> to vector<32x1xf32>
      %cst_11 = arith.constant 1.000000e+00 : f32
      %15 = vector.broadcast %cst_11 : f32 to vector<32x1xf32>
      %16 = arith.maximumf %14, %15 : vector<32x1xf32>
      %17 = tpu.reciprocal %16 {approx = true} : vector<32x1xf32> -> vector<32x1xf32>
      %18 = vector.broadcast %17 : vector<32x1xf32> to vector<32x128xf32>
      %19 = arith.mulf %13, %18 : vector<32x128xf32>
      %c0_12 = arith.constant 0 : index
      %c0_13 = arith.constant 0 : index
      %20 = vector.load %arg4[%c0_12, %c0_13] : memref<1x128xf32, #tpu.memory_space<vmem>>, vector<1x128xf32>
      %21 = vector.broadcast %20 : vector<1x128xf32> to vector<32x128xf32>
      %22 = arith.addf %19, %21 : vector<32x128xf32>
      %c0_14 = arith.constant 0 : index
      %23 = memref.load %arg5[%c0_14] : memref<1xf32, #tpu.memory_space<smem>>
      %cst_15 = arith.constant 0.000000e+00 : f32
      %24 = vector.broadcast %cst_15 : f32 to vector<32x128xf32>
      %25 = arith.cmpf ogt, %22, %24 : vector<32x128xf32>
      %26 = vector.broadcast %23 : f32 to vector<32x128xf32>
      %27 = arith.mulf %26, %22 : vector<32x128xf32>
      %28 = arith.select %25, %22, %27 : vector<32x128xi1>, vector<32x128xf32>
      %c0_16 = arith.constant 0 : index
      %c0_17 = arith.constant 0 : index
      %29 = vector.load %arg6[%c0_16, %c0_17] : memref<32x128xf32, #tpu.memory_space<vmem>>, vector<32x128xf32>
      tpu.vector_store %arg6[%c0_16, %c0_17], %28 {strides = array<i32>} : memref<32x128xf32, #tpu.memory_space<vmem>>, vector<32x128xf32>,
    } else {
    }
    return
  }
  func.func @transform_0(%arg0: i32, %arg1: i32) -> (i32, i32) {
    %c0_i32 = arith.constant 0 : i32
    return %arg0, %arg1 : i32, i32
  }
  func.func @transform_1(%arg0: i32, %arg1: i32) -> (i32, i32) {
    %c0_i32 = arith.constant 0 : i32
    %c0_i32_0 = arith.constant 0 : i32
    return %arg1, %c0_i32 : i32, i32
  }
  func.func @transform_2(%arg0: i32, %arg1: i32) -> (i32, i32) {
    %c0_i32 = arith.constant 0 : i32
    %c0_i32_0 = arith.constant 0 : i32
    %c0_i32_1 = arith.constant 0 : i32
    return %c0_i32, %c0_i32_0 : i32, i32
  }
  func.func @transform_3(%arg0: i32, %arg1: i32) -> i32 {
    %c0_i32 = arith.constant 0 : i32
    %c0_i32_0 = arith.constant 0 : i32
    return %c0_i32 : i32
  }
  func.func @transform_4(%arg0: i32, %arg1: i32) -> (i32, i32) {
    %c0_i32 = arith.constant 0 : i32
    %c0_i32_0 = arith.constant 0 : i32
    return %arg0, %c0_i32 : i32, i32
  }
}

</mosaic_0001>

<bundles_post_ra>
// kernel: bigraph_contrast_layer.1
= control target key start
LH: loop header
LB: loop body
LE: loop exit
PB: predicated region body
PF: predicated region fallthrough
CT: control target
= control target key end

     0   :  { %s721_s17 = smov 0   ;;  %s723_s18 = smov 0   ;;  %s817_s0 = inlined_call_operand.vmem [shape: s8[64,384], index: 0, kind: input, shape index: {}]   ;;  %s818_s1 = inlined_call_operand.vmem [shape: bf16[384,128], index: 1, kind: input, shape index: {}]   ;;  %s819_s2 = inlined_call_operand.vmem [shape: f32[1,128], index: 2, kind: input, shape index: {}]   ;;  %s820_s3 = inlined_call_operand.<no memory space> [shape: f32[1], index: 3, kind: input, shape index: {}]   ;;  %s821_s4 = inlined_call_operand.vmem [shape: f32[64,128], index: 4, kind: output, shape index: {}]  }
   0x1   :  { %9 = sst [smem:[#allocation2]] %s820_s3  ;;  %s725_s19 = smov 0  }
   0x2   :  { %s727_s20 = smov 0   ;;  %s729_s21 = smov 0  }
   0x3 LB: > { %s24_s3 = sadd.s32 1, %s681_s19  ;;  %s27_s22 = sadd.s32 1, %s685_s20  ;;  %s689_s21 = sphi %s729_s21, %s15_s21   ;;  %s685_s20 = sphi %s727_s20, %s825_s20   ;;  %s681_s19 = sphi %s725_s19, %s824_s19   ;;  %s677_s18 = sphi %s723_s18, %s823_s18   ;;  %s673_s17 = sphi %s721_s17, %s822_s17  }
   0x4   : > { %p25_p0 = scmp.ge.s32.totalorder %s24_s3, 3  ;;  %p541_p1 = scmp.ge.s32.totalorder %s689_s21, 1 }
   0x5   : > { %p191_p2 = scmp.lt.s32.totalorder %s689_s21, 7 }
   0x6   : > { %s827_s3 = smov (%p25_p0, %s24_s3), 0  ;;  %s829_s22 = smov (!%p25_p0, %s27_s22), %s685_s20 }
   0x7   : > { %p192_p3 = pnand %p541_p1, %p191_p2  ;;  %p29_p4 = scmp.ge.s32.totalorder %s829_s22, 2 }
   0x8   : > { %p225_p5 = scmp.lt.s32.totalorder (!%p192_p3), %s677_s18, 1  ;;  %p227_p6 = scmp.lt.s32.totalorder (!%p192_p3), %s673_s17, 2 }
   0x9   : > { %s831_s22 = smov (%p29_p4, %s829_s22), 0  ;;  %195 = sbr.rel (%p192_p3) target bundleno = 438 (0x1b6), region = 36 }
   0xa   : > { %s543_s23 = sshll.u32 (!%p192_p3), %s673_s17, 4  ;;  %s545_s24 = sshll.u32 (!%p192_p3), %s677_s18, 2 }
   0xb   : > { %p234_p7 = scmp.lt.s32.totalorder (!%p192_p3), %s543_s23, 47  ;;  %p240_p8 = scmp.lt.s32.totalorder (!%p192_p3), %s545_s24, 7 }
   0xc   : > { %p547_p9 = scmp.ne.s32.totalorder (!%p192_p3), %s673_s17, 0 }
  0x10   : > { %s833_s18 = smov (!%p225_p5, %s677_s18), 1  ;;  %s835_s23 = smov (!%p234_p7, %s543_s23), 47 }
  0x11   : > { %s228_s25 = scalar_select %p227_p6, %s673_s17, 2 }
  0x12   : > { %s590_s26 = smul.u32 3, %s833_s18  ;;  %s837_s24 = smov (!%p240_p8, %s545_s24), 7  ;;  %v691_v0 = vmov (!%p547_p9), 0.0  }
  0x13   : > { %s544_s6 = sshll.u32 %s835_s23, 2  ;;  %s546_s10 = sshll.u32 %s837_s24, 3 }
  0x14   : > { %s230_s27 = sadd.s32 %s590_s26, %s228_s25  ;;  %s762_s9 = scalar_lea.vmem %s818_s1, %s544_s6 }
  0x15   : > { %s542_s28 = sshll.u32 %s230_s27, 3  ;;  %s767_s13 = scalar_lea.vmem %s821_s4, %s546_s10 }
  0x16   : > { %s232_s5 = scalar_lea.vmem %s817_s0, %s542_s28  ;;  %249 = sbr.rel (%p547_p9) target bundleno = 29 (0x1d), region = 40  ;;  %250 = vst [vmem:[%s767_s13] sm:$0xff] (!%p547_p9), %v691_v0  ;;  %251 = vst [vmem:[%s767_s13 + $0x8] sm:$0xff] (!%p547_p9), %v691_v0 }
  0x17   : > { %252 = vst [vmem:[%s767_s13 + $0x10] sm:$0xff] (!%p547_p9), %v691_v0  ;;  %253 = vst [vmem:[%s767_s13 + $0x18] sm:$0xff] (!%p547_p9), %v691_v0 }
  0x1d PF: > { %v633_v1 = vld [vmem:[%s762_s9] sm:$0xff]   ;;  %v634_v2 = vld [vmem:[%s762_s9 + $0x8] sm:$0xff]   ;;  %v635_v3 = vld [vmem:[%s762_s9 + $0x10] sm:$0xff]   ;;  %p556_p10 = scmp.ne.s32.totalorder %s673_s17, 2 }
  0x1e   : > { %570 = vmatprep.subr.bf16.mxu0 %v633_v1  ;;  %v636_v4 = vld [vmem:[%s762_s9 + $0x18] sm:$0xff]   ;;  %v254_v5 = vld [vmem:[%s232_s5] sm:$0xff]  ;;  %v638_v8 = vld [vmem:[%s762_s9 + $0x28] sm:$0xff]   ;;  %v692_v27 = vmov (!%p556_p10), 16   ;;  %s433_s14 = sld [smem:[#allocation2]] (!%p556_p10) }
  0x1f   : > { %571 = vmatpush3.bf16.msra.mxu0 %v633_v1  ;;  %v255_v6 = vunpack.c.l.s8.bf16 %v254_v5  ;;  %v637_v7 = vld [vmem:[%s762_s9 + $0x20] sm:$0xff]   ;;  %v639_v9 = vld [vmem:[%s762_s9 + $0x30] sm:$0xff]   ;;  %v640_v10 = vld [vmem:[%s762_s9 + $0x38] sm:$0xff]   ;;  %v256_v11 = vunpack.c.h.s8.bf16 %v254_v5  ;;  %642 = vset.pattern.permute.xlu1 (!%p556_p10), %v692_v27 }
  0x20   : > { %572 = vmatprep.subr.bf16.mxu0 %v634_v2  ;;  %v257_v12 = vld [vmem:[%s767_s13] sm:$0xff]  ;;  %v260_v15 = vld [vmem:[%s767_s13 + $0x18] sm:$0xff]  ;;  %v258_v16 = vld [vmem:[%s767_s13 + $0x8] sm:$0xff]  ;;  %641 = vset.pattern.permute.xlu0 (!%p556_p10), %v692_v27 }
  0x21   : > { %586 = vmatprep.mubr.bf16.mxu0 %v255_v6  ;;  %v259_v17 = vld [vmem:[%s767_s13 + $0x10] sm:$0xff]  ;;  %v557_v38 = vld [vmem:[%s819_s2] ss:$0 sm:$0xff] (!%p556_p10) }
  0x23   : > { %573 = vmatpush3.bf16.msra.mxu0 %v634_v2 }
  0x24   : > { %574 = vmatprep.subr.bf16.mxu0 %v635_v3  ;;  %v438_v42 = vstv (!%p556_p10), %s433_s14 }
  0x27   : > { %575 = vmatpush3.bf16.msra.mxu0 %v635_v3 }
  0x28   : > { %576 = vmatprep.subr.bf16.mxu0 %v636_v4 }
  0x2b   : > { %577 = vmatpush3.bf16.msra.mxu0 %v636_v4 }
  0x2c   : > { %578 = vmatprep.subr.bf16.mxu0 %v637_v7 }
  0x2f   : > { %579 = vmatpush3.bf16.msra.mxu0 %v637_v7 }
  0x30   : > { %580 = vmatprep.subr.bf16.mxu0 %v638_v8 }
  0x33   : > { %581 = vmatpush3.bf16.msra.mxu0 %v638_v8 }
  0x34   : > { %582 = vmatprep.subr.bf16.mxu0 %v639_v9 }
  0x37   : > { %583 = vmatpush3.bf16.msra.mxu0 %v639_v9 }
  0x38   : > { %584 = vmatprep.subr.bf16.mxu0 %v640_v10 }
  0x3b   : > { %585 = vmatpush3.bf16.msra.mxu0 %v640_v10 }
  0x3e   : > { %587 = vmatmul.mubr.bf16.vlgmr.msra.gmra.mrb[0].mxu0 %v256_v11 }
 0x111   : > { %v588_v13 = vpop.f32.mrb[0].mxu0  ;;  %385 = sbr.rel (%p556_p10) target bundleno = 438 (0x1b6), region = 44 }
 0x112   : > { %v359_v14 = vpop.f32.mrb[1].mxu0  ;;  %v376_v22 = vadd.f32 %v588_v13, %v259_v17 }
 0x113   : > { %v374_v18 = vadd.f32 %v359_v14, %v257_v12  ;;  %v589_v19 = vpop.f32.mrb[2].mxu0 }
 0x114   : > { %v362_v20 = vpop.f32.mrb[3].mxu0  ;;  %v377_v23 = vadd.f32 %v589_v19, %v260_v15  ;;  %380 = vst [vmem:[%s767_s13 + $0x10] sm:$0xff] %v376_v22 }
 0x115   : > { %v375_v21 = vadd.f32 %v362_v20, %v258_v16  ;;  %378 = vst [vmem:[%s767_s13] sm:$0xff] %v374_v18 }
 0x116   : > { %381 = vst [vmem:[%s767_s13 + $0x18] sm:$0xff] %v377_v23 }
 0x117   : > { %379 = vst [vmem:[%s767_s13 + $0x8] sm:$0xff] %v375_v21 }
 0x11b   : > { %v388_v24 = vld [vmem:[%s767_s13 + $0x10] sm:$0xff] }
 0x11c   : > { %v386_v25 = vld [vmem:[%s767_s13] sm:$0xff]  ;;  %v392_v28 = vmax.f32 %v388_v24, 1.0 }
 0x11d   : > { %v389_v26 = vld [vmem:[%s767_s13 + $0x18] sm:$0xff]  ;;  %v390_v29 = vmax.f32 %v386_v25, 1.0 }
 0x11e   : > { %v393_v30 = vmax.f32 %v389_v26, 1.0  ;;  %v387_v31 = vld [vmem:[%s767_s13 + $0x8] sm:$0xff]  ;;  %643 = vrcp.f32 %v392_v28 }
 0x11f   : > { %v391_v32 = vmax.f32 %v387_v31, 1.0  ;;  %645 = vrcp.f32 %v390_v29 }
 0x120   : > { %647 = vrcp.f32 %v393_v30 }
 0x121   : > { %649 = vrcp.f32 %v391_v32 }
 0x128   : > { %v644_v33 = vpop.eup %643 }
 0x129   : > { %v646_v34 = vpop.eup %645  ;;  %410 = vperm.xlu1 %642, %v644_v33  }
 0x12a   : > { %v648_v35 = vpop.eup %647  ;;  %400 = vperm.xlu0 %641, %v646_v34  }
 0x12b   : > { %v650_v36 = vpop.eup %649 }
 0x12d   : > { %415 = vperm.xlu1 %642, %v648_v35  }
 0x12e   : > { %405 = vperm.xlu0 %641, %v650_v36  }
 0x1a8   : > { %v411_v37 = vpop.permute.xlu1 %410 }
 0x1a9   : > { %v420_v39 = vmul.f32 %v411_v37, %v388_v24  ;;  %v401_v40 = vpop.permute.xlu0 %400 }
 0x1aa   : > { %v418_v41 = vmul.f32 %v401_v40, %v386_v25 }
 0x1ab   : > { %v431_v45 = vadd.f32 %v557_v38, %v420_v39 }
 0x1ac   : > { %v429_v43 = vadd.f32 %v557_v38, %v418_v41  ;;  %v416_v44 = vpop.permute.xlu1 %415 }
 0x1ad   : > { %v421_v46 = vmul.f32 %v416_v44, %v389_v26  ;;  %v406_v47 = vpop.permute.xlu0 %405  ;;  %v441_v53 = vmul.f32 %v438_v42, %v431_v45  ;;  %vm436_vm1 = vcmp.gt.f32.partialorder %v431_v45, 0.0 }
 0x1ae   : > { %vm434_vm0 = vcmp.gt.f32.partialorder %v429_v43, 0.0  ;;  %v439_v48 = vmul.f32 %v438_v42, %v429_v43  ;;  %v419_v49 = vmul.f32 %v406_v47, %v387_v31 }
 0x1af   : > { %v432_v50 = vadd.f32 %v557_v38, %v421_v46  ;;  %v445_v57 = vsel %vm436_vm1, %v431_v45, %v441_v53 }
 0x1b0   : > { %v443_v51 = vsel %vm434_vm0, %v429_v43, %v439_v48  ;;  %v430_v52 = vadd.f32 %v557_v38, %v419_v49  ;;  %449 = vst [vmem:[%s767_s13 + $0x10] sm:$0xff] %v445_v57 }
 0x1b1   : > { %447 = vst [vmem:[%s767_s13] sm:$0xff] %v443_v51  ;;  %v442_v54 = vmul.f32 %v438_v42, %v432_v50  ;;  %vm437_vm3 = vcmp.gt.f32.partialorder %v432_v50, 0.0 }
 0x1b2   : > { %vm435_vm2 = vcmp.gt.f32.partialorder %v430_v52, 0.0  ;;  %v440_v55 = vmul.f32 %v438_v42, %v430_v52 }
 0x1b3   : > { %v446_v58 = vsel %vm437_vm3, %v432_v50, %v442_v54 }
 0x1b4   : > { %v444_v56 = vsel %vm435_vm2, %v430_v52, %v440_v55  ;;  %450 = vst [vmem:[%s767_s13 + $0x18] sm:$0xff] %v446_v58 }
 0x1b5   : > { %448 = vst [vmem:[%s767_s13 + $0x8] sm:$0xff] %v444_v56 }
 0x1b6 PF: > { %s15_s21 = sadd.s32 1, %s689_s21   ;;  %s822_s17 = smov %s681_s19 }
 0x1b7   : > { %p12_p11 = scmp.ge.s32.totalorder %s15_s21, 8   ;;  %s823_s18 = smov %s685_s20 }
 0x1b8   : > { %s824_s19 = smov %s827_s3  ;;  %s825_s20 = smov %s831_s22 }
 0x1b9   :  { %14 = sbr.rel (!%p12_p11) target bundleno = 3 (0x3), region = 77 }

</bundles_post_ra>
